<compile_context>
chip_gen: v7x
topology: tpu7x:2x2x1
jax: 0.10.0
libtpu: 0.0.40
codegen_flags: <defaults>
</compile_context>

<pallas_src>
import functools

import jax
import jax.numpy as jnp
from jax.experimental import pallas as pl
from jax.experimental.pallas import tpu as pltpu


# ----------------------------------------------------------------------------
# Fused Pallas kernel
# ----------------------------------------------------------------------------
def _decnn_fused_kernel(emb_ref, w12_ref, b12_ref, w3_ref, b3_ref,
                        w4_ref, b4_ref, w5_ref, b5_ref, wl_ref, bl_ref,
                        o_ref, x0_ref, x1_ref, x2_ref,
                        *, TB, L, P0, pad_a, Kmax, K3, mxu_dtype):
    """One grid step = TB whole sequences, fully fused conv/linear chain.

    emb_ref : (TB, L, C_in)            channels-last embeddings
    w12_ref : (Kmax*C_in, f1)          conv1||conv2 packed + centered, bf16
    w3/4/5  : (K3*f1, f1)              im2col-flattened conv weights, bf16
    wl_ref  : (f1, num_labels)         linear_ae weight, bf16
    b*_ref  : (1, F) f32 biases
    o_ref   : (TB, L, num_labels)      log-softmax scores
    x0_ref  : (TB, L+2*P0,   C_in) f32 VMEM scratch (padded embedding slab)
    x1/x2   : (TB, L+2*pad_a, f1)  f32 VMEM ping-pong activation slabs
    """
    C_in = x0_ref.shape[-1]
    f1 = x1_ref.shape[-1]
    M = TB * L

    # --- stage 0: stage the embedding slab with zero halos (in-kernel pad) ---
    if P0 > 0:
        zh0 = jnp.zeros((TB, P0, C_in), x0_ref.dtype)
        x0_ref[:, :P0, :] = zh0
        x0_ref[:, P0 + L:P0 + L + P0, :] = zh0
    x0_ref[:, P0:P0 + L, :] = emb_ref[...]

    if pad_a > 0:
        zh = jnp.zeros((TB, pad_a, f1), x1_ref.dtype)
        x1_ref[:, :pad_a, :] = zh
        x1_ref[:, pad_a + L:pad_a + L + pad_a, :] = zh
        x2_ref[:, :pad_a, :] = zh
        x2_ref[:, pad_a + L:pad_a + L + pad_a, :] = zh

    def conv(slab_ref, K, w_ref, b_ref):
        # im2col: K shifted (TB, L, C) slices -> (M, K*C) -> one MXU matmul.
        C = slab_ref.shape[-1]
        patch = jnp.concatenate(
            [slab_ref[:, k:k + L, :] for k in range(K)], axis=-1)
        patch = patch.reshape(M, K * C).astype(mxu_dtype)
        acc = jnp.dot(patch, w_ref[...], preferred_element_type=jnp.float32)
        return acc + b_ref[...]                       # (M, F) f32

    # conv1 || conv2 -> concat -> relu (single packed matmul, lane-dense store)
    h = jnp.maximum(conv(x0_ref, Kmax, w12_ref, b12_ref), 0.0)
    x1_ref[:, pad_a:pad_a + L, :] = h.reshape(TB, L, f1)

    # conv3 -> relu
    h = jnp.maximum(conv(x1_ref, K3, w3_ref, b3_ref), 0.0)
    x2_ref[:, pad_a:pad_a + L, :] = h.reshape(TB, L, f1)

    # conv4 -> relu
    h = jnp.maximum(conv(x2_ref, K3, w4_ref, b4_ref), 0.0)
    x1_ref[:, pad_a:pad_a + L, :] = h.reshape(TB, L, f1)

    # conv5 -> relu (kept as a value; no halo needed downstream)
    h = jnp.maximum(conv(x1_ref, K3, w5_ref, b5_ref), 0.0)    # (M, f1)

    # linear_ae + log_softmax over labels (max-stabilized, all f32)
    logits = jnp.dot(h.astype(mxu_dtype), wl_ref[...],
                     preferred_element_type=jnp.float32) + bl_ref[...]
    m = jnp.max(logits, axis=-1, keepdims=True)
    z = logits - m
    lse = jnp.log(jnp.sum(jnp.exp(z), axis=-1, keepdims=True))
    out = z - lse                                             # (M, num_labels)
    o_ref[...] = out.reshape(TB, L, o_ref.shape[-1]).astype(o_ref.dtype)


# ----------------------------------------------------------------------------
# Parameter init (conv weights stored channels-last friendly: (K, C_in, C_out))
# ----------------------------------------------------------------------------
def init_params(key, *, vocab, d_gen, d_dom, nums_filter, kernel_sizes,
                num_labels):
    c_in = d_gen + d_dom
    f0, f1 = nums_filter
    assert f1 == 2 * f0, "conv3 consumes cat(conv1, conv2) channels"
    k1, k2, k3 = kernel_sizes
    keys = jax.random.split(key, 14)

    def w(k, shape, scale=0.02):
        return (scale * jax.random.normal(k, shape)).astype(jnp.float32)

    return {
        "general_embedding": w(keys[0], (vocab, d_gen), 0.1),
        "domain_embedding": w(keys[1], (vocab, d_dom), 0.1),
        "conv1_w": w(keys[2], (k1, c_in, f0)),
        "conv1_b": w(keys[3], (f0,)),
        "conv2_w": w(keys[4], (k2, c_in, f0)),
        "conv2_b": w(keys[5], (f0,)),
        "conv3_w": w(keys[6], (k3, f1, f1)),
        "conv3_b": w(keys[7], (f1,)),
        "conv4_w": w(keys[8], (k3, f1, f1)),
        "conv4_b": w(keys[9], (f1,)),
        "conv5_w": w(keys[10], (k3, f1, f1)),
        "conv5_b": w(keys[11], (f1,)),
        "linear_w": w(keys[12], (f1, num_labels)),
        "linear_b": w(keys[13], (num_labels,)),
    }


# ----------------------------------------------------------------------------
# Forward (inference path, y=None) — one fused pallas_call
# ----------------------------------------------------------------------------
def forward(params, X_cnt, X_mask, X, *, nums_words, rows_per_tile=128,
            mxu_dtype=jnp.bfloat16):
    del X_cnt, X_mask   # unused on the y=None inference path
    pad_a, pad_b = nums_words

    w1, w2 = params["conv1_w"], params["conv2_w"]
    w3, w4, w5 = params["conv3_w"], params["conv4_w"], params["conv5_w"]
    wl = params["linear_w"]
    K1, C_in, f0 = w1.shape
    K2 = w2.shape[0]
    K3, f1, _ = w3.shape
    num_labels = wl.shape[1]
    assert K1 == 2 * pad_a + 1 and K2 == 2 * pad_b + 1 and K3 == 2 * pad_a + 1, \
        "module uses length-preserving (kernel, padding) pairs"
    assert f1 == 2 * f0, "conv3 expects cat(conv1, conv2) channels"

    # Embedding lookup + concat (gather glue; stays in XLA).
    emb = jnp.concatenate(
        [jnp.take(params["general_embedding"], X, axis=0),
         jnp.take(params["domain_embedding"], X, axis=0)],
        axis=-1).astype(jnp.float32)                           # (B, L, C_in)
    B, L, _ = emb.shape
    assert emb.shape[-1] == C_in

    # --- pack conv1 || conv2 into one centered weight (traced, tiny) --------
    P0 = max(pad_a, pad_b)
    Kmax = 2 * P0 + 1

    def center(w):  # (K, C, F) -> (Kmax, C, F), zero taps outside the kernel
        K = w.shape[0]
        off = P0 - (K - 1) // 2
        return jnp.zeros((Kmax,) + w.shape[1:], w.dtype).at[off:off + K].set(w)

    w12 = jnp.concatenate([center(w1), center(w2)], axis=-1)   # (Kmax,Cin,f1)
    w12 = w12.reshape(Kmax * C_in, f1).astype(mxu_dtype)
    b12 = jnp.concatenate([params["conv1_b"], params["conv2_b"]]).reshape(1, f1)
    w3m = w3.reshape(K3 * f1, f1).astype(mxu_dtype)
    w4m = w4.reshape(K3 * f1, f1).astype(mxu_dtype)
    w5m = w5.reshape(K3 * f1, f1).astype(mxu_dtype)
    wlm = wl.astype(mxu_dtype)
    b3 = params["conv3_b"].reshape(1, f1)
    b4 = params["conv4_b"].reshape(1, f1)
    b5 = params["conv5_b"].reshape(1, f1)
    bl = params["linear_b"].reshape(1, num_labels)

    # --- row tiling: TB sequences per grid step (~rows_per_tile of B*L) -----
    TB = max(1, min(B, rows_per_tile // max(L, 1)))
    if B >= 2:
        # Keep >=2 grid steps so v7x can shard the parallel axis over its 2 TCs.
        TB = min(TB, max(1, B // 2))
    Bp = ((B + TB - 1) // TB) * TB
    if Bp != B:
        emb = jnp.pad(emb, ((0, Bp - B), (0, 0), (0, 0)))
    grid = (Bp // TB,)

    kernel = functools.partial(
        _decnn_fused_kernel, TB=TB, L=L, P0=P0, pad_a=pad_a,
        Kmax=Kmax, K3=K3, mxu_dtype=mxu_dtype)

    # Advisory cost estimate for XLA's scheduler.
    flops = 2 * Bp * L * (Kmax * C_in * f1 + 3 * K3 * f1 * f1 + f1 * num_labels)
    weight_bytes = int((w12.size + w3m.size + w4m.size + w5m.size + wlm.size)
                       * jnp.dtype(mxu_dtype).itemsize)
    bytes_accessed = 4 * (Bp * L * C_in + Bp * L * num_labels) + weight_bytes
    cost = pl.CostEstimate(flops=int(flops),
                           transcendentals=int(Bp * L * num_labels),
                           bytes_accessed=int(bytes_accessed))

    out = pl.pallas_call(
        kernel,
        out_shape=jax.ShapeDtypeStruct((Bp, L, num_labels), jnp.float32),
        grid=grid,
        in_specs=[
            pl.BlockSpec((TB, L, C_in), lambda i: (i, 0, 0)),
            pl.BlockSpec((Kmax * C_in, f1), lambda i: (0, 0)),
            pl.BlockSpec((1, f1), lambda i: (0, 0)),
            pl.BlockSpec((K3 * f1, f1), lambda i: (0, 0)),
            pl.BlockSpec((1, f1), lambda i: (0, 0)),
            pl.BlockSpec((K3 * f1, f1), lambda i: (0, 0)),
            pl.BlockSpec((1, f1), lambda i: (0, 0)),
            pl.BlockSpec((K3 * f1, f1), lambda i: (0, 0)),
            pl.BlockSpec((1, f1), lambda i: (0, 0)),
            pl.BlockSpec((f1, num_labels), lambda i: (0, 0)),
            pl.BlockSpec((1, num_labels), lambda i: (0, 0)),
        ],
        out_specs=pl.BlockSpec((TB, L, num_labels), lambda i: (i, 0, 0)),
        scratch_shapes=[
            pltpu.VMEM((TB, L + 2 * P0, C_in), jnp.float32),
            pltpu.VMEM((TB, L + 2 * pad_a, f1), jnp.float32),
            pltpu.VMEM((TB, L + 2 * pad_a, f1), jnp.float32),
        ],
        compiler_params=pltpu.CompilerParams(
            dimension_semantics=("parallel",)),
        cost_estimate=cost,
    )(emb, w12, b12, w3m, b3, w4m, b4, w5m, b5, wlm, bl)

    return out[:B] if Bp != B else out                 # (B, L, num_labels)


# ----------------------------------------------------------------------------
# Pure-JAX reference (for correctness check only)
# ----------------------------------------------------------------------------
def forward_reference(params, X, *, nums_words):
    pad_a, pad_b = nums_words
    emb = jnp.concatenate([params["general_embedding"][X],
                           params["domain_embedding"][X]], axis=-1)

    def conv(x, w, b, pad):
        K = w.shape[0]
        L = x.shape[1]
        xp = jnp.pad(x, ((0, 0), (pad, pad), (0, 0)))
        acc = sum(jnp.einsum("bld,df->blf", xp[:, k:k + L, :], w[k])
                  for k in range(K))
        return acc + b

    c1 = jax.nn.relu(conv(emb, params["conv1_w"], params["conv1_b"], pad_a))
    c2 = jax.nn.relu(conv(emb, params["conv2_w"], params["conv2_b"], pad_b))
    x = jnp.concatenate([c1, c2], axis=-1)
    x = jax.nn.relu(conv(x, params["conv3_w"], params["conv3_b"], pad_a))
    x = jax.nn.relu(conv(x, params["conv4_w"], params["conv4_b"], pad_a))
    x = jax.nn.relu(conv(x, params["conv5_w"], params["conv5_b"], pad_a))
    logits = x @ params["linear_w"] + params["linear_b"]
    return jax.nn.log_softmax(logits, axis=-1)


if __name__ == "__main__":
    # Small shapes consistent with the module.
    B, L = 2, 16
    vocab = 50
    d_gen, d_dom = 64, 64               # C_in = 128
    nums_filter = (64, 128)             # f1 = 2 * f0 (cat of conv1/conv2)
    kernel_sizes = (3, 5, 3)
    nums_words = (1, 2)                 # length-preserving paddings
    num_labels = 8

    key = jax.random.PRNGKey(0)
    pkey, xkey = jax.random.split(key)
    params = init_params(pkey, vocab=vocab, d_gen=d_gen, d_dom=d_dom,
                         nums_filter=nums_filter, kernel_sizes=kernel_sizes,
                         num_labels=num_labels)

    X = jax.random.randint(xkey, (B, L), 0, vocab, dtype=jnp.int32)
    X_mask = jnp.ones((B, L), jnp.float32)
    X_cnt = jnp.full((B,), L, jnp.int32)

    fwd = jax.jit(functools.partial(forward, nums_words=nums_words))
    out = jax.block_until_ready(fwd(params, X_cnt, X_mask, X))

    assert out.shape == (B, L, num_labels)
    # Sanity: log_softmax rows sum to ~1 in prob space.
    assert bool(jnp.allclose(jnp.sum(jnp.exp(out), axis=-1), 1.0, atol=1e-4))
    # Numerics vs. pure-JAX f32 reference (bf16 MXU operands, f32 accumulate).
    ref = forward_reference(params, X, nums_words=nums_words)
    assert bool(jnp.allclose(out, ref, atol=2e-2)), float(
        jnp.max(jnp.abs(out - ref)))
    print("KERNEL_OK")
</pallas_src>

<mosaic_0001>
module attributes {stable_mosaic.version = 11 : i64} {
  func.func @_decnn_fused_kernel(%arg0: i32, %arg1: memref<1x16x128xf32, #tpu.memory_space<vmem>>, %arg2: memref<640x128xbf16, #tpu.memory_space<vmem>>, %arg3: memref<1x128xf32, #tpu.memory_space<vmem>>, %arg4: memref<384x128xbf16, #tpu.memory_space<vmem>>, %arg5: memref<1x128xf32, #tpu.memory_space<vmem>>, %arg6: memref<384x128xbf16, #tpu.memory_space<vmem>>, %arg7: memref<1x128xf32, #tpu.memory_space<vmem>>, %arg8: memref<384x128xbf16, #tpu.memory_space<vmem>>, %arg9: memref<1x128xf32, #tpu.memory_space<vmem>>, %arg10: memref<128x8xbf16, #tpu.memory_space<vmem>>, %arg11: memref<1x8xf32, #tpu.memory_space<vmem>>, %arg12: memref<1x16x8xf32, #tpu.memory_space<vmem>>, %arg13: memref<1x20x128xf32, #tpu.memory_space<vmem>>, %arg14: memref<1x18x128xf32, #tpu.memory_space<vmem>>, %arg15: memref<1x18x128xf32, #tpu.memory_space<vmem>>) attributes {dimension_semantics = [#tpu.dimension_semantics<parallel>], iteration_bounds = array<i64: 2>, scalar_prefetch = 0 : i64, scratch_operands = 3 : i64, tpu.core_type = #tpu.core_type<tc>, window_params = [{transform_indices = @transform_0, window_bounds = array<i64: 1, 16, 128>}, {pipeline_mode = #tpu.pipeline_mode<synchronous>, transform_indices = @transform_1, window_bounds = array<i64: 640, 128>}, {pipeline_mode = #tpu.pipeline_mode<synchronous>, transform_indices = @transform_2, window_bounds = array<i64: 1, 128>}, {pipeline_mode = #tpu.pipeline_mode<synchronous>, transform_indices = @transform_3, window_bounds = array<i64: 384, 128>}, {pipeline_mode = #tpu.pipeline_mode<synchronous>, transform_indices = @transform_4, window_bounds = array<i64: 1, 128>}, {pipeline_mode = #tpu.pipeline_mode<synchronous>, transform_indices = @transform_5, window_bounds = array<i64: 384, 128>}, {pipeline_mode = #tpu.pipeline_mode<synchronous>, transform_indices = @transform_6, window_bounds = array<i64: 1, 128>}, {pipeline_mode = #tpu.pipeline_mode<synchronous>, transform_indices = @transform_7, window_bounds = array<i64: 384, 128>}, {pipeline_mode = #tpu.pipeline_mode<synchronous>, transform_indices = @transform_8, window_bounds = array<i64: 1, 128>}, {pipeline_mode = #tpu.pipeline_mode<synchronous>, transform_indices = @transform_9, window_bounds = array<i64: 128, 8>}, {pipeline_mode = #tpu.pipeline_mode<synchronous>, transform_indices = @transform_10, window_bounds = array<i64: 1, 8>}, {transform_indices = @transform_11, window_bounds = array<i64: 1, 16, 8>}]} {
    %cst = arith.constant 0.000000e+00 : f32
    %0 = vector.broadcast %cst : f32 to vector<1x2x128xf32>
    %c0 = arith.constant 0 : index
    %c0_0 = arith.constant 0 : index
    %c0_1 = arith.constant 0 : index
    %1 = vector.load %arg13[%c0, %c0_0, %c0_1] : memref<1x20x128xf32, #tpu.memory_space<vmem>>, vector<1x2x128xf32>
    tpu.vector_store %arg13[%c0, %c0_0, %c0_1], %0 {strides = array<i32>} : memref<1x20x128xf32, #tpu.memory_space<vmem>>, vector<1x2x128xf32>,
    %c0_2 = arith.constant 0 : index
    %c18 = arith.constant 18 : index
    %c0_3 = arith.constant 0 : index
    %2 = vector.load %arg13[%c0_2, %c18, %c0_3] : memref<1x20x128xf32, #tpu.memory_space<vmem>>, vector<1x2x128xf32>
    tpu.vector_store %arg13[%c0_2, %c18, %c0_3], %0 {strides = array<i32>} : memref<1x20x128xf32, #tpu.memory_space<vmem>>, vector<1x2x128xf32>,
    %c0_4 = arith.constant 0 : index
    %c0_5 = arith.constant 0 : index
    %c0_6 = arith.constant 0 : index
    %3 = vector.load %arg1[%c0_4, %c0_5, %c0_6] : memref<1x16x128xf32, #tpu.memory_space<vmem>>, vector<1x16x128xf32>
    %c0_7 = arith.constant 0 : index
    %c2 = arith.constant 2 : index
    %c0_8 = arith.constant 0 : index
    %4 = vector.load %arg13[%c0_7, %c2, %c0_8] : memref<1x20x128xf32, #tpu.memory_space<vmem>>, vector<1x16x128xf32>
    tpu.vector_store %arg13[%c0_7, %c2, %c0_8], %3 {strides = array<i32>} : memref<1x20x128xf32, #tpu.memory_space<vmem>>, vector<1x16x128xf32>,
    %cst_9 = arith.constant 0.000000e+00 : f32
    %5 = vector.broadcast %cst_9 : f32 to vector<1x1x128xf32>
    %c0_10 = arith.constant 0 : index
    %c0_11 = arith.constant 0 : index
    %c0_12 = arith.constant 0 : index
    %6 = vector.load %arg14[%c0_10, %c0_11, %c0_12] : memref<1x18x128xf32, #tpu.memory_space<vmem>>, vector<1x1x128xf32>
    tpu.vector_store %arg14[%c0_10, %c0_11, %c0_12], %5 {strides = array<i32>} : memref<1x18x128xf32, #tpu.memory_space<vmem>>, vector<1x1x128xf32>,
    %c0_13 = arith.constant 0 : index
    %c17 = arith.constant 17 : index
    %c0_14 = arith.constant 0 : index
    %7 = vector.load %arg14[%c0_13, %c17, %c0_14] : memref<1x18x128xf32, #tpu.memory_space<vmem>>, vector<1x1x128xf32>
    tpu.vector_store %arg14[%c0_13, %c17, %c0_14], %5 {strides = array<i32>} : memref<1x18x128xf32, #tpu.memory_space<vmem>>, vector<1x1x128xf32>,
    %c0_15 = arith.constant 0 : index
    %c0_16 = arith.constant 0 : index
    %c0_17 = arith.constant 0 : index
    %8 = vector.load %arg15[%c0_15, %c0_16, %c0_17] : memref<1x18x128xf32, #tpu.memory_space<vmem>>, vector<1x1x128xf32>
    tpu.vector_store %arg15[%c0_15, %c0_16, %c0_17], %5 {strides = array<i32>} : memref<1x18x128xf32, #tpu.memory_space<vmem>>, vector<1x1x128xf32>,
    %c0_18 = arith.constant 0 : index
    %c17_19 = arith.constant 17 : index
    %c0_20 = arith.constant 0 : index
    %9 = vector.load %arg15[%c0_18, %c17_19, %c0_20] : memref<1x18x128xf32, #tpu.memory_space<vmem>>, vector<1x1x128xf32>
    tpu.vector_store %arg15[%c0_18, %c17_19, %c0_20], %5 {strides = array<i32>} : memref<1x18x128xf32, #tpu.memory_space<vmem>>, vector<1x1x128xf32>,
    %c0_21 = arith.constant 0 : index
    %c0_22 = arith.constant 0 : index
    %c0_23 = arith.constant 0 : index
    %10 = vector.load %arg13[%c0_21, %c0_22, %c0_23] : memref<1x20x128xf32, #tpu.memory_space<vmem>>, vector<1x16x128xf32>
    %c0_24 = arith.constant 0 : index
    %c1 = arith.constant 1 : index
    %c0_25 = arith.constant 0 : index
    %11 = vector.load %arg13[%c0_24, %c1, %c0_25] : memref<1x20x128xf32, #tpu.memory_space<vmem>>, vector<1x16x128xf32>
    %c0_26 = arith.constant 0 : index
    %c2_27 = arith.constant 2 : index
    %c0_28 = arith.constant 0 : index
    %12 = vector.load %arg13[%c0_26, %c2_27, %c0_28] : memref<1x20x128xf32, #tpu.memory_space<vmem>>, vector<1x16x128xf32>
    %c0_29 = arith.constant 0 : index
    %c3 = arith.constant 3 : index
    %c0_30 = arith.constant 0 : index
    %13 = vector.load %arg13[%c0_29, %c3, %c0_30] : memref<1x20x128xf32, #tpu.memory_space<vmem>>, vector<1x16x128xf32>
    %c0_31 = arith.constant 0 : index
    %c4 = arith.constant 4 : index
    %c0_32 = arith.constant 0 : index
    %14 = vector.load %arg13[%c0_31, %c4, %c0_32] : memref<1x20x128xf32, #tpu.memory_space<vmem>>, vector<1x16x128xf32>
    %15 = tpu.concatenate %10, %11, %12, %13, %14 in 2 : vector<1x16x128xf32>, vector<1x16x128xf32>, vector<1x16x128xf32>, vector<1x16x128xf32>, vector<1x16x128xf32> -> vector<1x16x640xf32>
    %16 = vector.shape_cast %15 : vector<1x16x640xf32> to vector<16x640xf32>
    %17 = arith.truncf %16 : vector<16x640xf32> to vector<16x640xbf16>
    %c0_33 = arith.constant 0 : index
    %c0_34 = arith.constant 0 : index
    %18 = vector.load %arg2[%c0_33, %c0_34] : memref<640x128xbf16, #tpu.memory_space<vmem>>, vector<640x128xbf16>
    %cst_35 = arith.constant dense<0.000000e+00> : vector<16x128xf32>
    %19 = tpu.matmul %17, %18, %cst_35 {dimension_numbers = #tpu.dot_dimension_numbers<[1], [0], [0], [1], [0, 0, 1, 1], [], []>} : vector<16x640xbf16>, vector<640x128xbf16>, vector<16x128xf32> -> vector<16x128xf32>
    %c0_36 = arith.constant 0 : index
    %c0_37 = arith.constant 0 : index
    %20 = vector.load %arg3[%c0_36, %c0_37] : memref<1x128xf32, #tpu.memory_space<vmem>>, vector<1x128xf32>
    %21 = vector.broadcast %20 : vector<1x128xf32> to vector<16x128xf32>
    %22 = arith.addf %19, %21 : vector<16x128xf32>
    %cst_38 = arith.constant 0.000000e+00 : f32
    %23 = vector.broadcast %cst_38 : f32 to vector<16x128xf32>
    %24 = arith.maximumf %22, %23 : vector<16x128xf32>
    %25 = vector.shape_cast %24 : vector<16x128xf32> to vector<1x16x128xf32>
    %c0_39 = arith.constant 0 : index
    %c1_40 = arith.constant 1 : index
    %c0_41 = arith.constant 0 : index
    %26 = vector.load %arg14[%c0_39, %c1_40, %c0_41] : memref<1x18x128xf32, #tpu.memory_space<vmem>>, vector<1x16x128xf32>
    tpu.vector_store %arg14[%c0_39, %c1_40, %c0_41], %25 {strides = array<i32>} : memref<1x18x128xf32, #tpu.memory_space<vmem>>, vector<1x16x128xf32>,
    %c0_42 = arith.constant 0 : index
    %c0_43 = arith.constant 0 : index
    %c0_44 = arith.constant 0 : index
    %27 = vector.load %arg14[%c0_42, %c0_43, %c0_44] : memref<1x18x128xf32, #tpu.memory_space<vmem>>, vector<1x16x128xf32>
    %c0_45 = arith.constant 0 : index
    %c1_46 = arith.constant 1 : index
    %c0_47 = arith.constant 0 : index
    %28 = vector.load %arg14[%c0_45, %c1_46, %c0_47] : memref<1x18x128xf32, #tpu.memory_space<vmem>>, vector<1x16x128xf32>
    %c0_48 = arith.constant 0 : index
    %c2_49 = arith.constant 2 : index
    %c0_50 = arith.constant 0 : index
    %29 = vector.load %arg14[%c0_48, %c2_49, %c0_50] : memref<1x18x128xf32, #tpu.memory_space<vmem>>, vector<1x16x128xf32>
    %30 = tpu.concatenate %27, %28, %29 in 2 : vector<1x16x128xf32>, vector<1x16x128xf32>, vector<1x16x128xf32> -> vector<1x16x384xf32>
    %31 = vector.shape_cast %30 : vector<1x16x384xf32> to vector<16x384xf32>
    %32 = arith.truncf %31 : vector<16x384xf32> to vector<16x384xbf16>
    %c0_51 = arith.constant 0 : index
    %c0_52 = arith.constant 0 : index
    %33 = vector.load %arg4[%c0_51, %c0_52] : memref<384x128xbf16, #tpu.memory_space<vmem>>, vector<384x128xbf16>
    %cst_53 = arith.constant dense<0.000000e+00> : vector<16x128xf32>
    %34 = tpu.matmul %32, %33, %cst_53 {dimension_numbers = #tpu.dot_dimension_numbers<[1], [0], [0], [1], [0, 0, 1, 1], [], []>} : vector<16x384xbf16>, vector<384x128xbf16>, vector<16x128xf32> -> vector<16x128xf32>
    %c0_54 = arith.constant 0 : index
    %c0_55 = arith.constant 0 : index
    %35 = vector.load %arg5[%c0_54, %c0_55] : memref<1x128xf32, #tpu.memory_space<vmem>>, vector<1x128xf32>
    %36 = vector.broadcast %35 : vector<1x128xf32> to vector<16x128xf32>
    %37 = arith.addf %34, %36 : vector<16x128xf32>
    %cst_56 = arith.constant 0.000000e+00 : f32
    %38 = vector.broadcast %cst_56 : f32 to vector<16x128xf32>
    %39 = arith.maximumf %37, %38 : vector<16x128xf32>
    %40 = vector.shape_cast %39 : vector<16x128xf32> to vector<1x16x128xf32>
    %c0_57 = arith.constant 0 : index
    %c1_58 = arith.constant 1 : index
    %c0_59 = arith.constant 0 : index
    %41 = vector.load %arg15[%c0_57, %c1_58, %c0_59] : memref<1x18x128xf32, #tpu.memory_space<vmem>>, vector<1x16x128xf32>
    tpu.vector_store %arg15[%c0_57, %c1_58, %c0_59], %40 {strides = array<i32>} : memref<1x18x128xf32, #tpu.memory_space<vmem>>, vector<1x16x128xf32>,
    %c0_60 = arith.constant 0 : index
    %c0_61 = arith.constant 0 : index
    %c0_62 = arith.constant 0 : index
    %42 = vector.load %arg15[%c0_60, %c0_61, %c0_62] : memref<1x18x128xf32, #tpu.memory_space<vmem>>, vector<1x16x128xf32>
    %c0_63 = arith.constant 0 : index
    %c1_64 = arith.constant 1 : index
    %c0_65 = arith.constant 0 : index
    %43 = vector.load %arg15[%c0_63, %c1_64, %c0_65] : memref<1x18x128xf32, #tpu.memory_space<vmem>>, vector<1x16x128xf32>
    %c0_66 = arith.constant 0 : index
    %c2_67 = arith.constant 2 : index
    %c0_68 = arith.constant 0 : index
    %44 = vector.load %arg15[%c0_66, %c2_67, %c0_68] : memref<1x18x128xf32, #tpu.memory_space<vmem>>, vector<1x16x128xf32>
    %45 = tpu.concatenate %42, %43, %44 in 2 : vector<1x16x128xf32>, vector<1x16x128xf32>, vector<1x16x128xf32> -> vector<1x16x384xf32>
    %46 = vector.shape_cast %45 : vector<1x16x384xf32> to vector<16x384xf32>
    %47 = arith.truncf %46 : vector<16x384xf32> to vector<16x384xbf16>
    %c0_69 = arith.constant 0 : index
    %c0_70 = arith.constant 0 : index
    %48 = vector.load %arg6[%c0_69, %c0_70] : memref<384x128xbf16, #tpu.memory_space<vmem>>, vector<384x128xbf16>
    %cst_71 = arith.constant dense<0.000000e+00> : vector<16x128xf32>
    %49 = tpu.matmul %47, %48, %cst_71 {dimension_numbers = #tpu.dot_dimension_numbers<[1], [0], [0], [1], [0, 0, 1, 1], [], []>} : vector<16x384xbf16>, vector<384x128xbf16>, vector<16x128xf32> -> vector<16x128xf32>
    %c0_72 = arith.constant 0 : index
    %c0_73 = arith.constant 0 : index
    %50 = vector.load %arg7[%c0_72, %c0_73] : memref<1x128xf32, #tpu.memory_space<vmem>>, vector<1x128xf32>
    %51 = vector.broadcast %50 : vector<1x128xf32> to vector<16x128xf32>
    %52 = arith.addf %49, %51 : vector<16x128xf32>
    %cst_74 = arith.constant 0.000000e+00 : f32
    %53 = vector.broadcast %cst_74 : f32 to vector<16x128xf32>
    %54 = arith.maximumf %52, %53 : vector<16x128xf32>
    %55 = vector.shape_cast %54 : vector<16x128xf32> to vector<1x16x128xf32>
    %c0_75 = arith.constant 0 : index
    %c1_76 = arith.constant 1 : index
    %c0_77 = arith.constant 0 : index
    %56 = vector.load %arg14[%c0_75, %c1_76, %c0_77] : memref<1x18x128xf32, #tpu.memory_space<vmem>>, vector<1x16x128xf32>
    tpu.vector_store %arg14[%c0_75, %c1_76, %c0_77], %55 {strides = array<i32>} : memref<1x18x128xf32, #tpu.memory_space<vmem>>, vector<1x16x128xf32>,
    %c0_78 = arith.constant 0 : index
    %c0_79 = arith.constant 0 : index
    %c0_80 = arith.constant 0 : index
    %57 = vector.load %arg14[%c0_78, %c0_79, %c0_80] : memref<1x18x128xf32, #tpu.memory_space<vmem>>, vector<1x16x128xf32>
    %c0_81 = arith.constant 0 : index
    %c1_82 = arith.constant 1 : index
    %c0_83 = arith.constant 0 : index
    %58 = vector.load %arg14[%c0_81, %c1_82, %c0_83] : memref<1x18x128xf32, #tpu.memory_space<vmem>>, vector<1x16x128xf32>
    %c0_84 = arith.constant 0 : index
    %c2_85 = arith.constant 2 : index
    %c0_86 = arith.constant 0 : index
    %59 = vector.load %arg14[%c0_84, %c2_85, %c0_86] : memref<1x18x128xf32, #tpu.memory_space<vmem>>, vector<1x16x128xf32>
    %60 = tpu.concatenate %57, %58, %59 in 2 : vector<1x16x128xf32>, vector<1x16x128xf32>, vector<1x16x128xf32> -> vector<1x16x384xf32>
    %61 = vector.shape_cast %60 : vector<1x16x384xf32> to vector<16x384xf32>
    %62 = arith.truncf %61 : vector<16x384xf32> to vector<16x384xbf16>
    %c0_87 = arith.constant 0 : index
    %c0_88 = arith.constant 0 : index
    %63 = vector.load %arg8[%c0_87, %c0_88] : memref<384x128xbf16, #tpu.memory_space<vmem>>, vector<384x128xbf16>
    %cst_89 = arith.constant dense<0.000000e+00> : vector<16x128xf32>
    %64 = tpu.matmul %62, %63, %cst_89 {dimension_numbers = #tpu.dot_dimension_numbers<[1], [0], [0], [1], [0, 0, 1, 1], [], []>} : vector<16x384xbf16>, vector<384x128xbf16>, vector<16x128xf32> -> vector<16x128xf32>
    %c0_90 = arith.constant 0 : index
    %c0_91 = arith.constant 0 : index
    %65 = vector.load %arg9[%c0_90, %c0_91] : memref<1x128xf32, #tpu.memory_space<vmem>>, vector<1x128xf32>
    %66 = vector.broadcast %65 : vector<1x128xf32> to vector<16x128xf32>
    %67 = arith.addf %64, %66 : vector<16x128xf32>
    %cst_92 = arith.constant 0.000000e+00 : f32
    %68 = vector.broadcast %cst_92 : f32 to vector<16x128xf32>
    %69 = arith.maximumf %67, %68 : vector<16x128xf32>
    %70 = arith.truncf %69 : vector<16x128xf32> to vector<16x128xbf16>
    %c0_93 = arith.constant 0 : index
    %c0_94 = arith.constant 0 : index
    %71 = vector.load %arg10[%c0_93, %c0_94] : memref<128x8xbf16, #tpu.memory_space<vmem>>, vector<128x8xbf16>
    %cst_95 = arith.constant dense<0.000000e+00> : vector<16x8xf32>
    %72 = tpu.matmul %70, %71, %cst_95 {dimension_numbers = #tpu.dot_dimension_numbers<[1], [0], [0], [1], [0, 0, 1, 1], [], []>} : vector<16x128xbf16>, vector<128x8xbf16>, vector<16x8xf32> -> vector<16x8xf32>
    %c0_96 = arith.constant 0 : index
    %c0_97 = arith.constant 0 : index
    %73 = vector.load %arg11[%c0_96, %c0_97] : memref<1x8xf32, #tpu.memory_space<vmem>>, vector<1x8xf32>
    %74 = vector.broadcast %73 : vector<1x8xf32> to vector<16x8xf32>
    %75 = arith.addf %72, %74 : vector<16x8xf32>
    %cst_98 = arith.constant dense<0xFF800000> : vector<16xf32>
    %76 = vector.multi_reduction <maximumf>, %75, %cst_98 [1] : vector<16x8xf32> to vector<16xf32>
    %77 = vector.shape_cast %76 : vector<16xf32> to vector<16x1xf32>
    %78 = vector.broadcast %77 : vector<16x1xf32> to vector<16x8xf32>
    %79 = arith.subf %75, %78 : vector<16x8xf32>
    %80 = math.exp %79 : vector<16x8xf32>
    %cst_99 = arith.constant dense<0.000000e+00> : vector<16xf32>
    %81 = vector.multi_reduction <add>, %80, %cst_99 [1] : vector<16x8xf32> to vector<16xf32>
    %82 = vector.shape_cast %81 : vector<16xf32> to vector<16x1xf32>
    %83 = math.log %82 : vector<16x1xf32>
    %84 = vector.broadcast %83 : vector<16x1xf32> to vector<16x8xf32>
    %85 = arith.subf %79, %84 : vector<16x8xf32>
    %86 = vector.shape_cast %85 : vector<16x8xf32> to vector<1x16x8xf32>
    %c0_100 = arith.constant 0 : index
    %c0_101 = arith.constant 0 : index
    %c0_102 = arith.constant 0 : index
    %87 = vector.load %arg12[%c0_100, %c0_101, %c0_102] : memref<1x16x8xf32, #tpu.memory_space<vmem>>, vector<1x16x8xf32>
    tpu.vector_store %arg12[%c0_100, %c0_101, %c0_102], %86 {strides = array<i32>} : memref<1x16x8xf32, #tpu.memory_space<vmem>>, vector<1x16x8xf32>,
    return
  }
  func.func @transform_0(%arg0: i32) -> (i32, i32, i32) {
    %c0_i32 = arith.constant 0 : i32
    %c0_i32_0 = arith.constant 0 : i32
    %c0_i32_1 = arith.constant 0 : i32
    return %arg0, %c0_i32, %c0_i32_0 : i32, i32, i32
  }
  func.func @transform_1(%arg0: i32) -> (i32, i32) {
    %c0_i32 = arith.constant 0 : i32
    %c0_i32_0 = arith.constant 0 : i32
    %c0_i32_1 = arith.constant 0 : i32
    return %c0_i32, %c0_i32_0 : i32, i32
  }
  func.func @transform_2(%arg0: i32) -> (i32, i32) {
    %c0_i32 = arith.constant 0 : i32
    %c0_i32_0 = arith.constant 0 : i32
    %c0_i32_1 = arith.constant 0 : i32
    return %c0_i32, %c0_i32_0 : i32, i32
  }
  func.func @transform_3(%arg0: i32) -> (i32, i32) {
    %c0_i32 = arith.constant 0 : i32
    %c0_i32_0 = arith.constant 0 : i32
    %c0_i32_1 = arith.constant 0 : i32
    return %c0_i32, %c0_i32_0 : i32, i32
  }
  func.func @transform_4(%arg0: i32) -> (i32, i32) {
    %c0_i32 = arith.constant 0 : i32
    %c0_i32_0 = arith.constant 0 : i32
    %c0_i32_1 = arith.constant 0 : i32
    return %c0_i32, %c0_i32_0 : i32, i32
  }
  func.func @transform_5(%arg0: i32) -> (i32, i32) {
    %c0_i32 = arith.constant 0 : i32
    %c0_i32_0 = arith.constant 0 : i32
    %c0_i32_1 = arith.constant 0 : i32
    return %c0_i32, %c0_i32_0 : i32, i32
  }
  func.func @transform_6(%arg0: i32) -> (i32, i32) {
    %c0_i32 = arith.constant 0 : i32
    %c0_i32_0 = arith.constant 0 : i32
    %c0_i32_1 = arith.constant 0 : i32
    return %c0_i32, %c0_i32_0 : i32, i32
  }
  func.func @transform_7(%arg0: i32) -> (i32, i32) {
    %c0_i32 = arith.constant 0 : i32
    %c0_i32_0 = arith.constant 0 : i32
    %c0_i32_1 = arith.constant 0 : i32
    return %c0_i32, %c0_i32_0 : i32, i32
  }
  func.func @transform_8(%arg0: i32) -> (i32, i32) {
    %c0_i32 = arith.constant 0 : i32
    %c0_i32_0 = arith.constant 0 : i32
    %c0_i32_1 = arith.constant 0 : i32
    return %c0_i32, %c0_i32_0 : i32, i32
  }
  func.func @transform_9(%arg0: i32) -> (i32, i32) {
    %c0_i32 = arith.constant 0 : i32
    %c0_i32_0 = arith.constant 0 : i32
    %c0_i32_1 = arith.constant 0 : i32
    return %c0_i32, %c0_i32_0 : i32, i32
  }
  func.func @transform_10(%arg0: i32) -> (i32, i32) {
    %c0_i32 = arith.constant 0 : i32
    %c0_i32_0 = arith.constant 0 : i32
    %c0_i32_1 = arith.constant 0 : i32
    return %c0_i32, %c0_i32_0 : i32, i32
  }
  func.func @transform_11(%arg0: i32) -> (i32, i32, i32) {
    %c0_i32 = arith.constant 0 : i32
    %c0_i32_0 = arith.constant 0 : i32
    %c0_i32_1 = arith.constant 0 : i32
    return %arg0, %c0_i32, %c0_i32_0 : i32, i32, i32
  }
}

</mosaic_0001>

<bundles_post_ra>
// kernel: forward.1
= control target key start
LH: loop header
LB: loop body
LE: loop exit
PB: predicated region body
PF: predicated region fallthrough
CT: control target
= control target key end

     0   :  { %s2543_s17 = smov 0   ;;  %s3008_s0 = inlined_call_operand.vmem [shape: f32[2,16,128], index: 0, kind: input, shape index: {}]   ;;  %s3009_s1 = inlined_call_operand.vmem [shape: bf16[640,128], index: 1, kind: input, shape index: {}]   ;;  %s3010_s2 = inlined_call_operand.vmem [shape: f32[1,128], index: 2, kind: input, shape index: {}]   ;;  %s3011_s3 = inlined_call_operand.vmem [shape: bf16[384,128], index: 3, kind: input, shape index: {}]   ;;  %s3012_s4 = inlined_call_operand.vmem [shape: f32[1,128], index: 4, kind: input, shape index: {}]   ;;  %s3013_s5 = inlined_call_operand.vmem [shape: bf16[384,128], index: 5, kind: input, shape index: {}]   ;;  %s3014_s6 = inlined_call_operand.vmem [shape: f32[1,128], index: 6, kind: input, shape index: {}]   ;;  %s3015_s7 = inlined_call_operand.vmem [shape: bf16[384,128], index: 7, kind: input, shape index: {}]   ;;  %s3016_s8 = inlined_call_operand.vmem [shape: f32[1,128], index: 8, kind: input, shape index: {}]   ;;  %s3017_s9 = inlined_call_operand.vmem [shape: bf16[128,8], index: 9, kind: input, shape index: {}]   ;;  %s3018_s10 = inlined_call_operand.vmem [shape: f32[1,8], index: 10, kind: input, shape index: {}]   ;;  %s3019_s11 = inlined_call_operand.vmem [shape: f32[2,16,8], index: 11, kind: output, shape index: {}]  }
   0x1 LB: > { %s1942_s18 = sadd.s32 4294967295, %s2479_s17   ;;  %p1946_p0 = scmp.ge.s32.totalorder %s2479_s17, 1  ;;  %s2479_s17 = sphi %s2543_s17, %s21_s17  }
   0x2   : > { %p337_p1 = scmp.lt.s32.totalorder %s2479_s17, 3 }
   0x4   : > { %p338_p2 = pnand %p1946_p0, %p337_p1 }
   0x5   : > { %v2345_v0 = vld [vmem:[%s3009_s1 + $0x40] sm:$0xff] (!%p338_p2)   ;;  %v2481_v3 = vmov (!%p338_p2), 0.0   ;;  %v2349_v5 = vld [vmem:[%s3009_s1 + $0x48] sm:$0xff] (!%p338_p2)   ;;  %v2353_v9 = vld [vmem:[%s3009_s1 + $0x50] sm:$0xff] (!%p338_p2)   ;;  %p377_p3 = scmp.lt.s32.totalorder (!%p338_p2), %s1942_s18, 1  ;;  %vm2482_vm0 = vmmov (!%p338_p2), 0  }
   0x6   : > { %341 = sbr.rel (%p338_p2) target bundleno = 1527 (0x5f7), region = 64  ;;  %v2346_v1 = vld [vmem:[%s3009_s1] sm:$0xff] (!%p338_p2)   ;;  %2080 = vmatprep.subr.bf16.mxu0 (!%p338_p2), %v2345_v0  ;;  %388 = vst [vmem:[#allocation2] sm:$0x3] (!%p338_p2), %v2481_v3  ;;  %389 = vst [vmem:[#allocation2 + $0x12] sm:$0x3] (!%p338_p2), %v2481_v3 }
   0x7   : > { %v2347_v2 = vld [vmem:[%s3009_s1 + $0xc0] sm:$0xff] (!%p338_p2)   ;;  %394 = vst [vmem:[#allocation3] sm:$0x1] (!%p338_p2), %v2481_v3  ;;  %395 = vst [vmem:[#allocation3 + $0x11] sm:$0x1] (!%p338_p2), %v2481_v3  ;;  %2081 = vmatpush3.bf16.msra.mxu0 (!%p338_p2), %v2346_v1  ;;  %v2350_v6 = vld [vmem:[%s3009_s1 + $0x8] sm:$0xff] (!%p338_p2)  }
   0x8   : > { %396 = vst [vmem:[#allocation4] sm:$0x1] (!%p338_p2), %v2481_v3  ;;  %397 = vst [vmem:[#allocation4 + $0x11] sm:$0x1] (!%p338_p2), %v2481_v3  ;;  %v2348_v4 = vld [vmem:[%s3009_s1 + $0x80] sm:$0xff] (!%p338_p2)   ;;  %2102 = vmatprep.subr.bf16.mxu1 (!%p338_p2), %v2347_v2  ;;  %2082 = vmatprep.subr.bf16.mxu0 (!%p338_p2), %v2349_v5  ;;  %v2351_v7 = vld [vmem:[%s3009_s1 + $0xc8] sm:$0xff] (!%p338_p2)  }
   0x9   : > { %2103 = vmatpush3.bf16.msra.mxu1 (!%p338_p2), %v2348_v4  ;;  %v2352_v8 = vld [vmem:[%s3009_s1 + $0x88] sm:$0xff] (!%p338_p2)   ;;  %v2354_v10 = vld [vmem:[%s3009_s1 + $0x10] sm:$0xff] (!%p338_p2)   ;;  %v2357_v13 = vld [vmem:[%s3009_s1 + $0x58] sm:$0xff] (!%p338_p2)   ;;  %vm1860_vm1 = vcmask (!%p338_p2), 64512  }
   0xa   : > { %2104 = vmatprep.subr.bf16.mxu1 (!%p338_p2), %v2351_v7  ;;  %v2355_v11 = vld [vmem:[%s3009_s1 + $0xd0] sm:$0xff] (!%p338_p2)   ;;  %v2358_v14 = vld [vmem:[%s3009_s1 + $0x18] sm:$0xff] (!%p338_p2)   ;;  %v2361_v17 = vld [vmem:[%s3009_s1 + $0x60] sm:$0xff] (!%p338_p2)  }
   0xb   : > { %2083 = vmatpush3.bf16.msra.mxu0 (!%p338_p2), %v2350_v6  ;;  %v2356_v12 = vld [vmem:[%s3009_s1 + $0x90] sm:$0xff] (!%p338_p2)   ;;  %v2359_v15 = vld [vmem:[%s3009_s1 + $0xd8] sm:$0xff] (!%p338_p2)   ;;  %v2362_v18 = vld [vmem:[%s3009_s1 + $0x20] sm:$0xff] (!%p338_p2)  }
   0xc   : > { %2084 = vmatprep.subr.bf16.mxu0 (!%p338_p2), %v2353_v9  ;;  %v2360_v16 = vld [vmem:[%s3009_s1 + $0x98] sm:$0xff] (!%p338_p2)   ;;  %v2363_v19 = vld [vmem:[%s3009_s1 + $0xe0] sm:$0xff] (!%p338_p2)   ;;  %v2365_v21 = vld [vmem:[%s3009_s1 + $0x68] sm:$0xff] (!%p338_p2)  }
   0xd   : > { %2105 = vmatpush3.bf16.msra.mxu1 %v2352_v8  ;;  %v2364_v20 = vld [vmem:[%s3009_s1 + $0xa0] sm:$0xff]   ;;  %v2366_v22 = vld [vmem:[%s3009_s1 + $0x28] sm:$0xff]   ;;  %s3021_s18 = smov (!%p377_p3, %s1942_s18), 1  ;;  %v2369_v25 = vld [vmem:[%s3009_s1 + $0x70] sm:$0xff]  }
   0xe   : > { %2106 = vmatprep.subr.bf16.mxu1 %v2355_v11  ;;  %v2367_v23 = vld [vmem:[%s3009_s1 + $0xe8] sm:$0xff]   ;;  %v2370_v26 = vld [vmem:[%s3009_s1 + $0x30] sm:$0xff]   ;;  %s2078_s20 = sshll.u32 %s3021_s18, 4  ;;  %v2373_v29 = vld [vmem:[%s3009_s1 + $0x78] sm:$0xff]  }
   0xf   : > { %2085 = vmatpush3.bf16.msra.mxu0 %v2354_v10  ;;  %v2368_v24 = vld [vmem:[%s3009_s1 + $0xa8] sm:$0xff]   ;;  %v2371_v27 = vld [vmem:[%s3009_s1 + $0xf0] sm:$0xff]   ;;  %s381_s29 = scalar_lea.vmem %s3008_s0, %s2078_s20  ;;  %v2374_v30 = vld [vmem:[%s3009_s1 + $0x38] sm:$0xff]   ;;  %s386_s13 = scalar_lea.vmem %s3019_s11, %s2078_s20 }
  0x10   : > { %2086 = vmatprep.subr.bf16.mxu0 %v2357_v13  ;;  %v2372_v28 = vld [vmem:[%s3009_s1 + $0xb0] sm:$0xff]   ;;  %v2375_v31 = vld [vmem:[%s3009_s1 + $0xf8] sm:$0xff]   ;;  %v390_v32 = vld [vmem:[%s381_s29] sm:$0xff] }
  0x11   : > { %2107 = vmatpush3.bf16.msra.mxu1 %v2356_v12  ;;  %v391_v33 = vld [vmem:[%s381_s29 + $0x8] sm:$0xff]  ;;  %392 = vst [vmem:[#allocation2 + $0x2] sm:$0xff] %v390_v32  ;;  %v2376_v34 = vld [vmem:[%s3009_s1 + $0xb8] sm:$0xff]   ;;  %v2377_v35 = vld [vmem:[%s3009_s1 + $0x100] sm:$0xff]  }
  0x12   : > { %2108 = vmatprep.subr.bf16.mxu1 %v2359_v15  ;;  %393 = vst [vmem:[#allocation2 + $0xa] sm:$0xff] %v391_v33  ;;  %v410_v43 = vpack.c.bf16 %v391_v33, %v390_v32  ;;  %v2378_v46 = vld [vmem:[%s3009_s1 + $0x108] sm:$0xff]   ;;  %v2379_v47 = vld [vmem:[%s3009_s1 + $0x110] sm:$0xff]   ;;  %v2380_v48 = vld [vmem:[%s3009_s1 + $0x118] sm:$0xff]  }
  0x13   : > { %2087 = vmatpush3.bf16.msra.mxu0 %v2358_v14  ;;  %v2381_v49 = vld [vmem:[%s3009_s1 + $0x120] sm:$0xff]   ;;  %v2382_v50 = vld [vmem:[%s3009_s1 + $0x128] sm:$0xff]   ;;  %v2383_v51 = vld [vmem:[%s3009_s1 + $0x130] sm:$0xff]  }
  0x14   : > { %2088 = vmatprep.subr.bf16.mxu0 %v2361_v17  ;;  %v2384_v52 = vld [vmem:[%s3009_s1 + $0x138] sm:$0xff]   ;;  %v2385_v56 = vld [vmem:[%s3011_s3 + $0x40] sm:$0xff]   ;;  %v2388_v59 = vld [vmem:[%s3011_s3 + $0x48] sm:$0xff]  }
  0x15   : > { %2109 = vmatpush3.bf16.msra.mxu1 %v2360_v16  ;;  %v2386_v57 = vld [vmem:[%s3011_s3 + $0x80] sm:$0xff]   ;;  %v2389_v60 = vld [vmem:[%s3011_s3 + $0x88] sm:$0xff]   ;;  %v2391_v62 = vld [vmem:[%s3011_s3 + $0x50] sm:$0xff]  }
  0x16   : > { %2110 = vmatprep.subr.bf16.mxu1 %v2363_v19  ;;  %v2387_v58 = vld [vmem:[%s3011_s3] sm:$0xff]   ;;  %v2390_v61 = vld [vmem:[%s3011_s3 + $0x8] sm:$0xff]   ;;  %v2392_v63 = vld [vmem:[%s3011_s3 + $0x90] sm:$0xff]  }
  0x17   : > { %2089 = vmatpush3.bf16.msra.mxu0 %v2362_v18  ;;  %v2393_v0 = vld [vmem:[%s3011_s3 + $0x10] sm:$0xff]   ;;  %v2394_v1 = vld [vmem:[%s3011_s3 + $0x58] sm:$0xff]   ;;  %v2397_v5 = vld [vmem:[%s3011_s3 + $0x60] sm:$0xff]  }
  0x18   : > { %2090 = vmatprep.subr.bf16.mxu0 %v2365_v21  ;;  %v400_v36 = vld [vmem:[#allocation2 + $0x1] sm:$0xff]  ;;  %v2395_v2 = vld [vmem:[%s3011_s3 + $0x98] sm:$0xff]   ;;  %v2403_v11 = vld [vmem:[%s3011_s3 + $0x70] sm:$0xff]  }
  0x19   : > { %2111 = vmatpush3.bf16.msra.mxu1 %v2364_v20  ;;  %v401_v37 = vld [vmem:[#allocation2 + $0x9] sm:$0xff]  ;;  %v398_v38 = vld [vmem:[#allocation2] sm:$0xff]  ;;  %v2396_v4 = vld [vmem:[%s3011_s3 + $0x18] sm:$0xff]  }
  0x1a   : > { %2112 = vmatprep.subr.bf16.mxu1 %v2367_v23  ;;  %v409_v39 = vpack.c.bf16 %v401_v37, %v400_v36  ;;  %v399_v40 = vld [vmem:[#allocation2 + $0x8] sm:$0xff]  ;;  %v2398_v6 = vld [vmem:[%s3011_s3 + $0xa0] sm:$0xff]   ;;  %v2404_v12 = vld [vmem:[%s3011_s3 + $0xb0] sm:$0xff]  }
  0x1b   : > { %2091 = vmatpush3.bf16.msra.mxu0 %v2366_v22  ;;  %v404_v41 = vld [vmem:[#allocation2 + $0x3] sm:$0xff]  ;;  %v405_v42 = vld [vmem:[#allocation2 + $0xb] sm:$0xff]  ;;  %v408_v44 = vpack.c.bf16 %v399_v40, %v398_v38  ;;  %v2406_v14 = vld [vmem:[%s3011_s3 + $0x78] sm:$0xff]  }
  0x1c   : > { %2092 = vmatprep.subr.bf16.mxu0 %v2369_v25  ;;  %v411_v45 = vpack.c.bf16 %v405_v42, %v404_v41  ;;  %772 = vmatprep.mubr.bf16.mxu0 %v409_v39  ;;  %v406_v53 = vld [vmem:[#allocation2 + $0x4] sm:$0xff]  ;;  %v407_v54 = vld [vmem:[#allocation2 + $0xc] sm:$0xff]  ;;  %v2407_v15 = vld [vmem:[%s3011_s3 + $0xb8] sm:$0xff]  }
  0x1d   : > { %2113 = vmatpush3.bf16.msra.mxu1 %v2368_v24  ;;  %v412_v55 = vpack.c.bf16 %v407_v54, %v406_v53  ;;  %v2399_v7 = vld [vmem:[%s3011_s3 + $0x20] sm:$0xff]   ;;  %v2400_v8 = vld [vmem:[%s3011_s3 + $0x68] sm:$0xff]   ;;  %v2405_v13 = vld [vmem:[%s3011_s3 + $0x30] sm:$0xff]  }
  0x1e   : > { %2114 = vmatprep.subr.bf16.mxu1 %v2371_v27  ;;  %813 = vmatprep.mubr.bf16.mxu1 %v411_v45  ;;  %v2401_v9 = vld [vmem:[%s3011_s3 + $0xa8] sm:$0xff]   ;;  %v2408_v16 = vld [vmem:[%s3011_s3 + $0x38] sm:$0xff]   ;;  %v2409_v17 = vld [vmem:[%s3013_s5 + $0x40] sm:$0xff]  }
  0x1f   : > { %2093 = vmatpush3.bf16.msra.mxu0 %v2370_v26  ;;  %v2402_v10 = vld [vmem:[%s3011_s3 + $0x28] sm:$0xff]   ;;  %v1951_v19 = vld [vmem:[%s3010_s2] ss:$0 sm:$0xff] }
  0x20   : > { %2094 = vmatprep.subr.bf16.mxu0 %v2373_v29  ;;  %v2410_v45 = vld [vmem:[%s3013_s5 + $0x80] sm:$0xff]   ;;  %v2413_v53 = vld [vmem:[%s3013_s5 + $0x88] sm:$0xff]  }
  0x21   : > { %2115 = vmatpush3.bf16.msra.mxu1 %v2372_v28  ;;  %v2414_v54 = vld [vmem:[%s3013_s5 + $0x8] sm:$0xff]  }
  0x22   : > { %2116 = vmatprep.subr.bf16.mxu1 %v2375_v31 }
  0x23   : > { %2095 = vmatpush3.bf16.msra.mxu0 %v2374_v30 }
  0x24   : > { %2235 = vmatprep.subr.bf16.mxu0 %v2481_v3 }
  0x25   : > { %2117 = vmatpush3.bf16.msra.mxu1 %v2376_v34 }
  0x26   : > { %773 = vmatmul.mubr.bf16.vlgmr.msra.gmra.mrb[0].mxu0 %v408_v44  ;;  %2133 = vmatprep.subr.bf16.mxu1 %v2385_v56  ;;  %v2416_v56 = vld [vmem:[%s3013_s5 + $0x90] sm:$0xff]  }
  0x27   : > { %2236 = vmatpush3.bf16.msra.mxu0 %v2377_v35  ;;  %2251 = vmatprep.mubr.msk.bf16.mxu0 %vm2482_vm0, %v2481_v3 }
  0x28   : > { %814 = vmatmul.mubr.bf16.vlgmr.msra.gmra.mrb[0].mxu1 %v410_v43  ;;  %2237 = vmatprep.subr.bf16.mxu0 %v2481_v3 }
  0x29   : > { %2134 = vmatpush3.bf16.msra.mxu1 %v2387_v58  ;;  %v2418_v58 = vld [vmem:[%s3013_s5 + $0x58] sm:$0xff]  }
  0x2a   : > { %2135 = vmatprep.subr.bf16.mxu1 %v2388_v59  ;;  %v2419_v59 = vld [vmem:[%s3013_s5 + $0x98] sm:$0xff]  }
  0x2b   : > { %2238 = vmatpush3.bf16.msra.mxu0 %v2378_v46  ;;  %v2411_v46 = vld [vmem:[%s3013_s5] sm:$0xff]  }
  0x2c   : > { %2239 = vmatprep.subr.bf16.mxu0 %v2481_v3 }
  0x2d   : > { %2136 = vmatpush3.bf16.msra.mxu1 %v2390_v61  ;;  %v2421_v61 = vld [vmem:[%s3013_s5 + $0x60] sm:$0xff]  }
  0x2e   : > { %2137 = vmatprep.subr.bf16.mxu1 %v2391_v62  ;;  %v2422_v62 = vld [vmem:[%s3013_s5 + $0xa0] sm:$0xff]  }
  0x2f   : > { %2240 = vmatpush3.bf16.msra.mxu0 %v2379_v47 }
  0x30   : > { %2241 = vmatprep.subr.bf16.mxu0 %v2481_v3 }
  0x31   : > { %2138 = vmatpush3.bf16.msra.mxu1 %v2393_v0  ;;  %v2424_v0 = vld [vmem:[%s3013_s5 + $0x68] sm:$0xff]  }
  0x32   : > { %2139 = vmatprep.subr.bf16.mxu1 %v2394_v1  ;;  %v2425_v1 = vld [vmem:[%s3013_s5 + $0xa8] sm:$0xff]  }
  0x33   : > { %2242 = vmatpush3.bf16.msra.mxu0 %v2380_v48 }
  0x34   : > { %2243 = vmatprep.subr.bf16.mxu0 %v2481_v3 }
  0x35   : > { %2140 = vmatpush3.bf16.msra.mxu1 %v2396_v4  ;;  %v2427_v4 = vld [vmem:[%s3013_s5 + $0x70] sm:$0xff]  }
  0x36   : > { %2141 = vmatprep.subr.bf16.mxu1 %v2397_v5  ;;  %v2428_v5 = vld [vmem:[%s3013_s5 + $0xb0] sm:$0xff]  }
  0x37   : > { %2244 = vmatpush3.bf16.msra.mxu0 %v2381_v49 }
  0x38   : > { %2245 = vmatprep.subr.bf16.mxu0 %v2481_v3 }
  0x39   : > { %2142 = vmatpush3.bf16.msra.mxu1 %v2399_v7  ;;  %v2430_v7 = vld [vmem:[%s3013_s5 + $0x78] sm:$0xff]  }
  0x3a   : > { %2143 = vmatprep.subr.bf16.mxu1 %v2400_v8  ;;  %v2431_v8 = vld [vmem:[%s3013_s5 + $0xb8] sm:$0xff]  }
  0x3b   : > { %2246 = vmatpush3.bf16.msra.mxu0 %v2382_v50 }
  0x3c   : > { %2247 = vmatprep.subr.bf16.mxu0 %v2481_v3 }
  0x3d   : > { %2144 = vmatpush3.bf16.msra.mxu1 %v2402_v10  ;;  %v2433_v10 = vld [vmem:[%s3015_s7 + $0x40] sm:$0xff]  }
  0x3e   : > { %2145 = vmatprep.subr.bf16.mxu1 %v2403_v11 }
  0x3f   : > { %2248 = vmatpush3.bf16.msra.mxu0 %v2383_v51 }
  0x40   : > { %2249 = vmatprep.subr.bf16.mxu0 %v2481_v3 }
  0x41   : > { %2146 = vmatpush3.bf16.msra.mxu1 %v2405_v13 }
  0x42   : > { %2147 = vmatprep.subr.bf16.mxu1 %v2406_v14  ;;  %v1992_v14 = vld [vmem:[%s3012_s4] ss:$0 sm:$0xff] }
  0x43   : > { %2250 = vmatpush3.bf16.msra.mxu0 %v2384_v52  ;;  %v2412_v52 = vld [vmem:[%s3013_s5 + $0x48] sm:$0xff]  }
  0x44   : > { %2255 = vmatprep.subr.bf16.mxu0 %v2481_v3 }
  0x45   : > { %2148 = vmatpush3.bf16.msra.mxu1 %v2408_v16 }
  0x46   : > { %2252 = vmatmul.mubr.bf16.vlgmr.msra.gmra.mrb[4].mxu0 %v412_v55  ;;  %2164 = vmatprep.subr.bf16.mxu1 %v2409_v17  ;;  %v2415_v55 = vld [vmem:[%s3013_s5 + $0x50] sm:$0xff]  }
  0x47   : > { %2271 = vmatprep.mubr.msk.bf16.mxu0 %vm2482_vm0, %v2481_v3  ;;  %2256 = vmatpush3.bf16.msra.mxu0 %v2386_v57  ;;  %v2417_v57 = vld [vmem:[%s3013_s5 + $0x10] sm:$0xff]  }
  0x48   : > { %2257 = vmatprep.subr.bf16.mxu0 %v2481_v3 }
  0x4b   : > { %2258 = vmatpush3.bf16.msra.mxu0 %v2389_v60  ;;  %v2420_v60 = vld [vmem:[%s3013_s5 + $0x18] sm:$0xff]  }
  0x4c   : > { %2259 = vmatprep.subr.bf16.mxu0 %v2481_v3 }
  0x4f   : > { %2260 = vmatpush3.bf16.msra.mxu0 %v2392_v63  ;;  %v2423_v63 = vld [vmem:[%s3013_s5 + $0x20] sm:$0xff]  }
  0x50   : > { %2261 = vmatprep.subr.bf16.mxu0 %v2481_v3 }
  0x53   : > { %2262 = vmatpush3.bf16.msra.mxu0 %v2395_v2  ;;  %v2426_v2 = vld [vmem:[%s3013_s5 + $0x28] sm:$0xff]  }
  0x54   : > { %2263 = vmatprep.subr.bf16.mxu0 %v2481_v3 }
  0x57   : > { %2264 = vmatpush3.bf16.msra.mxu0 %v2398_v6  ;;  %v2429_v6 = vld [vmem:[%s3013_s5 + $0x30] sm:$0xff]  }
  0x58   : > { %2265 = vmatprep.subr.bf16.mxu0 %v2481_v3 }
  0x5b   : > { %2266 = vmatpush3.bf16.msra.mxu0 %v2401_v9  ;;  %v2432_v9 = vld [vmem:[%s3013_s5 + $0x38] sm:$0xff]  }
  0x5c   : > { %2267 = vmatprep.subr.bf16.mxu0 %v2481_v3 }
  0x5f   : > { %2268 = vmatpush3.bf16.msra.mxu0 %v2404_v12 }
  0x60   : > { %2269 = vmatprep.subr.bf16.mxu0 %v2481_v3 }
  0x63   : > { %2270 = vmatpush3.bf16.msra.mxu0 %v2407_v15 }
  0x64   : > { %2275 = vmatprep.subr.bf16.mxu0 %v2481_v3 }
  0xf9   : > { %v2096_v18 = vpop.f32.mrb[0].mxu0 }
  0xfa   : > { %v2097_v20 = vpop.f32.mrb[1].mxu0 }
  0xfb   : > { %v2118_v21 = vpop.f32.mrb[0].mxu1  ;;  %v2098_v22 = vadd.f32 %v2097_v20, %v2096_v18  ;;  %v2099_v23 = vpop.f32.mrb[2].mxu0 }
  0xfc   : > { %v2119_v24 = vpop.f32.mrb[1].mxu1  ;;  %v2100_v25 = vpop.f32.mrb[3].mxu0 }
  0xfd   : > { %v2120_v26 = vadd.f32 %v2119_v24, %v2118_v21  ;;  %v2121_v27 = vpop.f32.mrb[2].mxu1  ;;  %v775_v28 = vadd.f32 %v2098_v22, %v1951_v19  ;;  %v2101_v29 = vadd.f32 %v2100_v25, %v2099_v23 }
  0xfe   : > { %v2122_v30 = vpop.f32.mrb[3].mxu1 }
  0xff   : > { %v2123_v31 = vadd.f32 %v2122_v30, %v2121_v27  ;;  %v778_v32 = vadd.f32 %v2101_v29, %v1951_v19  ;;  %v816_v33 = vadd.f32 %v2120_v26, %v775_v28  ;;  %v2434_v30 = vld [vmem:[%s3015_s7 + $0x80] sm:$0xff]  }
 0x101   : > { %v819_v34 = vadd.f32 %v2123_v31, %v778_v32  ;;  %v2435_v31 = vld [vmem:[%s3015_s7] sm:$0xff]  }
 0x119   : > { %v856_v35 = vpop.f32.mrb[4].mxu0 }
 0x11a   : > { %v857_v36 = vadd.f32 %v856_v35, %v816_v33  ;;  %v2253_v37 = vpop.f32.mrb[5].mxu0 }
 0x11b   : > { %v859_v38 = vpop.f32.mrb[6].mxu0  ;;  %v2436_v37 = vld [vmem:[%s3015_s7 + $0x48] sm:$0xff]  }
 0x11c   : > { %v863_v39 = vmax.f32 %v857_v36, 0.0  ;;  %v860_v40 = vadd.f32 %v859_v38, %v819_v34  ;;  %v2254_v41 = vpop.f32.mrb[7].mxu0  ;;  %v2437_v38 = vld [vmem:[%s3015_s7 + $0x88] sm:$0xff]  }
 0x11d   : > { %v2440_v41 = vld [vmem:[%s3015_s7 + $0x90] sm:$0xff]  }
 0x11e   : > { %865 = vst [vmem:[#allocation3 + $0x1] sm:$0xff] %v863_v39  ;;  %v864_v42 = vmax.f32 %v860_v40, 0.0  ;;  %v2439_v40 = vld [vmem:[%s3015_s7 + $0x50] sm:$0xff]  }
 0x120   : > { %866 = vst [vmem:[#allocation3 + $0x9] sm:$0xff] %v864_v42  ;;  %v874_v43 = vpack.c.bf16 %v864_v42, %v863_v39  ;;  %v2438_v39 = vld [vmem:[%s3015_s7 + $0x8] sm:$0xff]   ;;  %v2441_v42 = vld [vmem:[%s3015_s7 + $0x10] sm:$0xff]  }
 0x122   : > { %1107 = vmatprep.mubr.bf16.mxu1 %v874_v43  ;;  %v2442_v43 = vld [vmem:[%s3015_s7 + $0x58] sm:$0xff]  }
 0x125   : > { %v867_v44 = vld [vmem:[#allocation3] sm:$0xff] }
 0x127   : > { %v871_v47 = vld [vmem:[#allocation3 + $0x2] sm:$0xff]  ;;  %v872_v48 = vld [vmem:[#allocation3 + $0xa] sm:$0xff] }
 0x128   : > { %v868_v49 = vld [vmem:[#allocation3 + $0x8] sm:$0xff]  ;;  %v875_v50 = vpack.c.bf16 %v872_v48, %v871_v47 }
 0x129   : > { %v873_v51 = vpack.c.bf16 %v868_v49, %v867_v44  ;;  %v2443_v44 = vld [vmem:[%s3015_s7 + $0x98] sm:$0xff]   ;;  %v2446_v47 = vld [vmem:[%s3015_s7 + $0xa0] sm:$0xff]   ;;  %v2448_v49 = vld [vmem:[%s3015_s7 + $0x68] sm:$0xff]  }
 0x12a   : > { %2272 = vmatmul.mubr.bf16.vlgmr.msra.gmra.mrb[8].mxu0 %v875_v50  ;;  %v2447_v48 = vld [vmem:[%s3015_s7 + $0x20] sm:$0xff]   ;;  %v2449_v50 = vld [vmem:[%s3015_s7 + $0xa8] sm:$0xff]  }
 0x12b   : > { %1108 = vmatmul.mubr.bf16.vlgmr.msra.gmra.mrb[4].mxu1 %v873_v51  ;;  %2276 = vmatpush3.bf16.msra.mxu0 %v2410_v45  ;;  %v2444_v45 = vld [vmem:[%s3015_s7 + $0x18] sm:$0xff]   ;;  %v2450_v51 = vld [vmem:[%s3015_s7 + $0x28] sm:$0xff]  }
 0x12c   : > { %2165 = vmatpush3.bf16.msra.mxu1 %v2411_v46  ;;  %2277 = vmatprep.subr.bf16.mxu0 %v2481_v3  ;;  %v2445_v46 = vld [vmem:[%s3015_s7 + $0x60] sm:$0xff]  }
 0x12d   : > { %2166 = vmatprep.subr.bf16.mxu1 %v2412_v52  ;;  %2291 = vmatprep.mubr.msk.bf16.mxu0 %vm2482_vm0, %v2481_v3  ;;  %v2451_v52 = vld [vmem:[%s3015_s7 + $0x70] sm:$0xff]  }
 0x12f   : > { %2278 = vmatpush3.bf16.msra.mxu0 %v2413_v53  ;;  %v2452_v53 = vld [vmem:[%s3015_s7 + $0xb0] sm:$0xff]  }
 0x130   : > { %2167 = vmatpush3.bf16.msra.mxu1 %v2414_v54  ;;  %2279 = vmatprep.subr.bf16.mxu0 %v2481_v3  ;;  %v2453_v54 = vld [vmem:[%s3015_s7 + $0x30] sm:$0xff]  }
 0x131   : > { %2168 = vmatprep.subr.bf16.mxu1 %v2415_v55  ;;  %v2454_v55 = vld [vmem:[%s3015_s7 + $0x78] sm:$0xff]  }
 0x133   : > { %2280 = vmatpush3.bf16.msra.mxu0 %v2416_v56  ;;  %v2455_v56 = vld [vmem:[%s3015_s7 + $0xb8] sm:$0xff]  }
 0x134   : > { %2169 = vmatpush3.bf16.msra.mxu1 %v2417_v57  ;;  %2281 = vmatprep.subr.bf16.mxu0 %v2481_v3  ;;  %v2456_v57 = vld [vmem:[%s3015_s7 + $0x38] sm:$0xff]  }
 0x135   : > { %2170 = vmatprep.subr.bf16.mxu1 %v2418_v58 }
 0x137   : > { %2282 = vmatpush3.bf16.msra.mxu0 %v2419_v59 }
 0x138   : > { %2171 = vmatpush3.bf16.msra.mxu1 %v2420_v60  ;;  %2283 = vmatprep.subr.bf16.mxu0 %v2481_v3 }
 0x139   : > { %2172 = vmatprep.subr.bf16.mxu1 %v2421_v61  ;;  %v2017_v61 = vld [vmem:[%s3014_s6] ss:$0 sm:$0xff] }
 0x13b   : > { %2284 = vmatpush3.bf16.msra.mxu0 %v2422_v62 }
 0x13c   : > { %2173 = vmatpush3.bf16.msra.mxu1 %v2423_v63  ;;  %2285 = vmatprep.subr.bf16.mxu0 %v2481_v3 }
 0x13d   : > { %2174 = vmatprep.subr.bf16.mxu1 %v2424_v0 }
 0x13f   : > { %2286 = vmatpush3.bf16.msra.mxu0 %v2425_v1 }
 0x140   : > { %2175 = vmatpush3.bf16.msra.mxu1 %v2426_v2  ;;  %2287 = vmatprep.subr.bf16.mxu0 %v2481_v3 }
 0x141   : > { %2176 = vmatprep.subr.bf16.mxu1 %v2427_v4 }
 0x143   : > { %2288 = vmatpush3.bf16.msra.mxu0 %v2428_v5 }
 0x144   : > { %2177 = vmatpush3.bf16.msra.mxu1 %v2429_v6  ;;  %2289 = vmatprep.subr.bf16.mxu0 %v2481_v3 }
 0x145   : > { %2178 = vmatprep.subr.bf16.mxu1 %v2430_v7 }
 0x147   : > { %2290 = vmatpush3.bf16.msra.mxu0 %v2431_v8 }
 0x148   : > { %2179 = vmatpush3.bf16.msra.mxu1 %v2432_v9  ;;  %2295 = vmatprep.subr.bf16.mxu0 %v2481_v3 }
 0x149   : > { %2195 = vmatprep.subr.bf16.mxu1 %v2433_v10 }
 0x1fd   : > { %v1150_v11 = vpop.f32.mrb[8].mxu0 }
 0x1fe   : > { %v2149_v12 = vpop.f32.mrb[4].mxu1  ;;  %v2273_v13 = vpop.f32.mrb[9].mxu0 }
 0x1ff   : > { %v2150_v15 = vpop.f32.mrb[5].mxu1  ;;  %v1153_v17 = vpop.f32.mrb[10].mxu0 }
 0x200   : > { %v2151_v16 = vadd.f32 %v2150_v15, %v2149_v12  ;;  %v2152_v18 = vpop.f32.mrb[6].mxu1  ;;  %v2274_v19 = vpop.f32.mrb[11].mxu0 }
 0x201   : > { %v2153_v20 = vpop.f32.mrb[7].mxu1 }
 0x202   : > { %v1110_v21 = vadd.f32 %v2151_v16, %v1992_v14  ;;  %v2154_v22 = vadd.f32 %v2153_v20, %v2152_v18  ;;  %v2458_v20 = vld [vmem:[%s3017_s9 + $0x8] sm:$0xff]  }
 0x204   : > { %v1151_v23 = vadd.f32 %v1150_v11, %v1110_v21  ;;  %v1113_v24 = vadd.f32 %v2154_v22, %v1992_v14  ;;  %v2457_v14 = vld [vmem:[%s3017_s9] sm:$0xff]   ;;  %v2459_v21 = vld [vmem:[%s3017_s9 + $0x10] sm:$0xff]   ;;  %v2460_v22 = vld [vmem:[%s3017_s9 + $0x18] sm:$0xff]  }
 0x206   : > { %v1157_v25 = vmax.f32 %v1151_v23, 0.0  ;;  %v1154_v26 = vadd.f32 %v1153_v17, %v1113_v24  ;;  %v2461_v23 = vld [vmem:[%s3017_s9 + $0x20] sm:$0xff]   ;;  %v2462_v24 = vld [vmem:[%s3017_s9 + $0x28] sm:$0xff]  }
 0x208   : > { %1159 = vst [vmem:[#allocation4 + $0x1] sm:$0xff] %v1157_v25  ;;  %v1158_v27 = vmax.f32 %v1154_v26, 0.0  ;;  %v2464_v26 = vld [vmem:[%s3017_s9 + $0x38] sm:$0xff]  }
 0x20a   : > { %1160 = vst [vmem:[#allocation4 + $0x9] sm:$0xff] %v1158_v27  ;;  %v1168_v28 = vpack.c.bf16 %v1158_v27, %v1157_v25  ;;  %v2463_v25 = vld [vmem:[%s3017_s9 + $0x30] sm:$0xff]  }
 0x20c   : > { %1401 = vmatprep.mubr.bf16.mxu1 %v1168_v28 }
 0x20f   : > { %v1161_v29 = vld [vmem:[#allocation4] sm:$0xff] }
 0x211   : > { %v1165_v32 = vld [vmem:[#allocation4 + $0x2] sm:$0xff]  ;;  %v1166_v33 = vld [vmem:[#allocation4 + $0xa] sm:$0xff] }
 0x212   : > { %v1162_v34 = vld [vmem:[#allocation4 + $0x8] sm:$0xff]  ;;  %v1169_v35 = vpack.c.bf16 %v1166_v33, %v1165_v32 }
 0x213   : > { %v1167_v36 = vpack.c.bf16 %v1162_v34, %v1161_v29 }
 0x214   : > { %2292 = vmatmul.mubr.bf16.vlgmr.msra.gmra.mrb[12].mxu0 %v1169_v35 }
 0x215   : > { %1402 = vmatmul.mubr.bf16.vlgmr.msra.gmra.mrb[8].mxu1 %v1167_v36  ;;  %2296 = vmatpush3.bf16.msra.mxu0 %v2434_v30  ;;  %v2042_v30 = vld [vmem:[%s3016_s8] ss:$0 sm:$0xff] }
 0x216   : > { %2196 = vmatpush3.bf16.msra.mxu1 %v2435_v31  ;;  %2297 = vmatprep.subr.bf16.mxu0 %v2481_v3 }
 0x217   : > { %2197 = vmatprep.subr.bf16.mxu1 %v2436_v37  ;;  %2311 = vmatprep.mubr.msk.bf16.mxu0 %vm2482_vm0, %v2481_v3 }
 0x219   : > { %2298 = vmatpush3.bf16.msra.mxu0 %v2437_v38 }
 0x21a   : > { %2198 = vmatpush3.bf16.msra.mxu1 %v2438_v39  ;;  %2299 = vmatprep.subr.bf16.mxu0 %v2481_v3 }
 0x21b   : > { %2199 = vmatprep.subr.bf16.mxu1 %v2439_v40 }
 0x21d   : > { %2300 = vmatpush3.bf16.msra.mxu0 %v2440_v41 }
 0x21e   : > { %2200 = vmatpush3.bf16.msra.mxu1 %v2441_v42  ;;  %2301 = vmatprep.subr.bf16.mxu0 %v2481_v3 }
 0x21f   : > { %2201 = vmatprep.subr.bf16.mxu1 %v2442_v43 }
 0x221   : > { %2302 = vmatpush3.bf16.msra.mxu0 %v2443_v44  ;;  %v2067_v44 = vld [vmem:[%s3018_s10] ss:$0 sm:$0xff] }
 0x222   : > { %2202 = vmatpush3.bf16.msra.mxu1 %v2444_v45  ;;  %2303 = vmatprep.subr.bf16.mxu0 %v2481_v3 }
 0x223   : > { %2203 = vmatprep.subr.bf16.mxu1 %v2445_v46 }
 0x225   : > { %2304 = vmatpush3.bf16.msra.mxu0 %v2446_v47 }
 0x226   : > { %2204 = vmatpush3.bf16.msra.mxu1 %v2447_v48  ;;  %2305 = vmatprep.subr.bf16.mxu0 %v2481_v3 }
 0x227   : > { %2205 = vmatprep.subr.bf16.mxu1 %v2448_v49 }
 0x229   : > { %2306 = vmatpush3.bf16.msra.mxu0 %v2449_v50 }
 0x22a   : > { %2206 = vmatpush3.bf16.msra.mxu1 %v2450_v51  ;;  %2307 = vmatprep.subr.bf16.mxu0 %v2481_v3 }
 0x22b   : > { %2207 = vmatprep.subr.bf16.mxu1 %v2451_v52 }
 0x22d   : > { %2308 = vmatpush3.bf16.msra.mxu0 %v2452_v53 }
 0x22e   : > { %2208 = vmatpush3.bf16.msra.mxu1 %v2453_v54  ;;  %2309 = vmatprep.subr.bf16.mxu0 %v2481_v3 }
 0x22f   : > { %2209 = vmatprep.subr.bf16.mxu1 %v2454_v55 }
 0x231   : > { %2310 = vmatpush3.bf16.msra.mxu0 %v2455_v56 }
 0x232   : > { %2210 = vmatpush3.bf16.msra.mxu1 %v2456_v57 }
 0x233   : > { %2315 = vmatprep.subr.bf16.mxu1 %v2481_v3 }
 0x2e7   : > { %v1444_v58 = vpop.f32.mrb[12].mxu0 }
 0x2e8   : > { %v2180_v59 = vpop.f32.mrb[8].mxu1  ;;  %v2293_v60 = vpop.f32.mrb[13].mxu0 }
 0x2e9   : > { %v2181_v62 = vpop.f32.mrb[9].mxu1  ;;  %v1447_v0 = vpop.f32.mrb[14].mxu0 }
 0x2ea   : > { %v2182_v63 = vadd.f32 %v2181_v62, %v2180_v59  ;;  %v2183_v1 = vpop.f32.mrb[10].mxu1  ;;  %v2294_v2 = vpop.f32.mrb[15].mxu0 }
 0x2eb   : > { %v2184_v4 = vpop.f32.mrb[11].mxu1 }
 0x2ec   : > { %v1404_v5 = vadd.f32 %v2182_v63, %v2017_v61  ;;  %v2185_v6 = vadd.f32 %v2184_v4, %v2183_v1 }
 0x2ee   : > { %v1445_v7 = vadd.f32 %v1444_v58, %v1404_v5  ;;  %v1407_v8 = vadd.f32 %v2185_v6, %v2017_v61 }
 0x2f0   : > { %v1451_v9 = vmax.f32 %v1445_v7, 0.0  ;;  %v1448_v10 = vadd.f32 %v1447_v0, %v1407_v8 }
 0x2f2   : > { %1453 = vst [vmem:[#allocation3 + $0x1] sm:$0xff] %v1451_v9  ;;  %v1452_v11 = vmax.f32 %v1448_v10, 0.0 }
 0x2f4   : > { %1454 = vst [vmem:[#allocation3 + $0x9] sm:$0xff] %v1452_v11  ;;  %v1462_v12 = vpack.c.bf16 %v1452_v11, %v1451_v9 }
 0x2f6   : > { %1695 = vmatprep.mubr.bf16.mxu1 %v1462_v12 }
 0x2f9   : > { %v1455_v13 = vld [vmem:[#allocation3] sm:$0xff] }
 0x2fb   : > { %v1459_v15 = vld [vmem:[#allocation3 + $0x2] sm:$0xff]  ;;  %v1460_v16 = vld [vmem:[#allocation3 + $0xa] sm:$0xff] }
 0x2fc   : > { %v1456_v17 = vld [vmem:[#allocation3 + $0x8] sm:$0xff]  ;;  %v1463_v18 = vpack.c.bf16 %v1460_v16, %v1459_v15 }
 0x2fd   : > { %v1461_v19 = vpack.c.bf16 %v1456_v17, %v1455_v13 }
 0x2fe   : > { %2312 = vmatmul.mubr.bf16.vlgmr.msra.gmra.mrb[16].mxu0 %v1463_v18 }
 0x2ff   : > { %1696 = vmatmul.mubr.bf16.vlgmr.msra.gmra.mrb[12].mxu1 %v1461_v19 }
 0x300   : > { %2316 = vmatpush3.bf16.msra.mxu1 %v2457_v14  ;;  %2331 = vmatprep.mubr.msk.bf16.mxu1 %vm2482_vm0, %v2481_v3 }
 0x301   : > { %2317 = vmatprep.subr.bf16.mxu1 %v2481_v3 }
 0x304   : > { %2318 = vmatpush3.bf16.msra.mxu1 %v2458_v20 }
 0x305   : > { %2319 = vmatprep.subr.bf16.mxu1 %v2481_v3 }
 0x308   : > { %2320 = vmatpush3.bf16.msra.mxu1 %v2459_v21 }
 0x309   : > { %2321 = vmatprep.subr.bf16.mxu1 %v2481_v3 }
 0x30c   : > { %2322 = vmatpush3.bf16.msra.mxu1 %v2460_v22 }
 0x30d   : > { %2323 = vmatprep.subr.bf16.mxu1 %v2481_v3 }
 0x310   : > { %2324 = vmatpush3.bf16.msra.mxu1 %v2461_v23 }
 0x311   : > { %2325 = vmatprep.subr.bf16.mxu1 %v2481_v3 }
 0x314   : > { %2326 = vmatpush3.bf16.msra.mxu1 %v2462_v24 }
 0x315   : > { %2327 = vmatprep.subr.bf16.mxu1 %v2481_v3 }
 0x318   : > { %2328 = vmatpush3.bf16.msra.mxu1 %v2463_v25 }
 0x319   : > { %2329 = vmatprep.subr.bf16.mxu1 %v2481_v3 }
 0x31c   : > { %2330 = vmatpush3.bf16.msra.mxu1 %v2464_v26 }
 0x3d1   : > { %v1738_v27 = vpop.f32.mrb[16].mxu0 }
 0x3d2   : > { %v2211_v28 = vpop.f32.mrb[12].mxu1  ;;  %v2313_v29 = vpop.f32.mrb[17].mxu0 }
 0x3d3   : > { %v2212_v31 = vpop.f32.mrb[13].mxu1  ;;  %v1741_v33 = vpop.f32.mrb[18].mxu0 }
 0x3d4   : > { %v2213_v32 = vadd.f32 %v2212_v31, %v2211_v28  ;;  %v2214_v34 = vpop.f32.mrb[14].mxu1  ;;  %v2314_v35 = vpop.f32.mrb[19].mxu0 }
 0x3d5   : > { %v2215_v36 = vpop.f32.mrb[15].mxu1 }
 0x3d6   : > { %v1698_v37 = vadd.f32 %v2213_v32, %v2042_v30  ;;  %v2216_v3 = vadd.f32 %v2215_v36, %v2214_v34 }
 0x3d8   : > { %v1739_v38 = vadd.f32 %v1738_v27, %v1698_v37  ;;  %v1701_v39 = vadd.f32 %v2216_v3, %v2042_v30 }
 0x3da   : > { %v1742_v40 = vadd.f32 %v1741_v33, %v1701_v39  ;;  %v1745_v41 = vmax.f32 %v1739_v38, 0.0 }
 0x3dc   : > { %v1746_v42 = vmax.f32 %v1742_v40, 0.0 }
 0x3de   : > { %v1747_v43 = vpack.c.bf16 %v1746_v42, %v1745_v41 }
 0x3e0   : > { %2332 = vmatmul.mubr.bf16.vlgmr.msra.gmra.mrb[16].mxu1 %v1747_v43 }
 0x4b3   : > { %v1853_v45 = vpop.f32.mrb[16].mxu1 }
 0x4b4   : > { %v1854_v46 = vadd.f32 %v2067_v44, %v1853_v45  ;;  %v2333_v47 = vpop.f32.mrb[17].mxu1 }
 0x4b5   : > { %v1856_v48 = vpop.f32.mrb[18].mxu1 }
 0x4b6   : > { %v1857_v49 = vadd.f32 %v2067_v44, %v1856_v48  ;;  %v2334_v50 = vpop.f32.mrb[19].mxu1  ;;  %v1861_v51 = vsel %vm1860_vm1, %v1854_v46, -inf }
 0x4b7   : > { %1862 = vmax.xlane.f32.xlu0 %v1861_v51 }
 0x4b8   : > { %v1864_v52 = vsel %vm1860_vm1, %v1857_v49, -inf }
 0x4bb   : > { %1865 = vmax.xlane.f32.xlu0 %v1864_v52 }
 0x544   : > { %v1863_v53 = vpop.xlane.xlu0 %1862 }
 0x545   : > { %v1867_v54 = vsub.f32 %v1854_v46, %v1863_v53 }
 0x547   : > { %v1869_v55 = vmul.f32 1.442695, %v1867_v54 }
 0x548   : > { %v1866_v56 = vpop.xlane.xlu0 %1865 }
 0x549   : > { %2465 = vpow2.f32 %v1869_v55  ;;  %v1868_v57 = vsub.f32 %v1857_v49, %v1866_v56 }
 0x54b   : > { %v1871_v58 = vmul.f32 1.442695, %v1868_v57 }
 0x54d   : > { %2467 = vpow2.f32 %v1871_v58 }
 0x553   : > { %v2466_v59 = vpop.eup %2465 }
 0x554   : > { %v1873_v60 = vsel %vm1860_vm1, %v2466_v59, 0.0 }
 0x555   : > { %1874 = vadd.xlane.f32.xlu1 %v1873_v60 }
 0x557   : > { %v2468_v61 = vpop.eup %2467 }
 0x558   : > { %v1876_v62 = vsel %vm1860_vm1, %v2468_v61, 0.0 }
 0x559   : > { %1877 = vadd.xlane.f32.xlu1 %v1876_v62 }
 0x5e2   : > { %v1875_v63 = vpop.xlane.xlu1 %1874 }
 0x5e3   : > { %2469 = vlog2.f32 %v1875_v63 }
 0x5e6   : > { %v1878_v0 = vpop.xlane.xlu1 %1877 }
 0x5e7   : > { %2471 = vlog2.f32 %v1878_v0 }
 0x5ed   : > { %v2470_v1 = vpop.eup %2469 }
 0x5ee   : > { %v1880_v2 = vmul.f32 0.6931472, %v2470_v1 }
 0x5f0   : > { %v1883_v4 = vsub.f32 %v1867_v54, %v1880_v2 }
 0x5f1   : > { %v2472_v5 = vpop.eup %2471 }
 0x5f2   : > { %1885 = vst.msk [vmem:[%s386_s13] sm:$0xff] %vm1860_vm1, %v1883_v4  ;;  %v1882_v6 = vmul.f32 0.6931472, %v2472_v5 }
 0x5f4   : > { %v1884_v7 = vsub.f32 %v1868_v57, %v1882_v6 }
 0x5f6   : > { %1886 = vst.msk [vmem:[%s386_s13 + $0x8] sm:$0xff] %vm1860_vm1, %v1884_v7 }
 0x5f7 PF: > { %s21_s17 = sadd.s32 1, %s2479_s17  }
 0x5f8   : > { %p18_p4 = scmp.ge.s32.totalorder %s21_s17, 4  }
 0x5fa   :  { %20 = sbr.rel (!%p18_p4) target bundleno = 1 (0x1), region = 94 }

</bundles_post_ra>
